<compile_context>
chip_gen: v5e
topology: v5e:2x2
jax: 0.10.0
libtpu: 0.0.40
codegen_flags: <defaults>
</compile_context>

<pallas_src>
import math
import functools

import jax
import jax.numpy as jnp
from jax.experimental import pallas as pl
from jax.experimental.pallas import tpu as pltpu


def _round_up(x, m):
    return (x + m - 1) // m * m


def _embed_kernel(ids_ref, lut_ref, out_ref, acc_ref, *, scale):
    """Computes one (T, d_model) output tile, accumulating over vocab tiles.

    ids_ref: (1, T, 1) int32 VMEM block of token ids for this token tile.
    lut_ref: (tV, d_model) VMEM slab of the embedding table (vocab tile v).
    out_ref: (T, d_model) output tile (written only on the last vocab step).
    acc_ref: (T, d_model) f32 VMEM accumulator scratch.
    """
    v = pl.program_id(1)

    @pl.when(v == 0)
    def _init():
        acc_ref[...] = jnp.zeros_like(acc_ref)

    ids = ids_ref[0]                                   # (T, 1) int32
    T = ids.shape[0]
    tV = lut_ref.shape[0]

    # (T, tV) one-hot selector for this vocab tile.
    col = jax.lax.broadcasted_iota(jnp.int32, (T, tV), 1) + v * tV
    one_hot = (ids == col).astype(lut_ref.dtype)

    # Dense MXU "gather": each one-hot row has exactly one 1.0.  HIGHEST precision
    # keeps f32 table values exact through the multi-pass MXU.
    acc_ref[...] += jnp.dot(
        one_hot, lut_ref[...],
        preferred_element_type=jnp.float32,
        precision=jax.lax.Precision.HIGHEST,
    )

    @pl.when(v == pl.num_programs(1) - 1)
    def _finalize():
        out_ref[...] = (acc_ref[...] * scale).astype(out_ref.dtype)


def embedding_forward(token_ids, lut, *, tokens_per_tile=256, vocab_tile=512):
    """token_ids: (B, S) int; lut: (vocab, d_model) -> (B, S, d_model) = lut[ids] * sqrt(d_model)."""
    B, S = token_ids.shape
    vocab, d_model = lut.shape
    n_tok = B * S
    scale = float(math.sqrt(d_model))

    # Token tiling: T tokens per grid step, multiple of 8 (dense f32 sublane stores).
    T = min(_round_up(tokens_per_tile, 8), _round_up(n_tok, 8))
    n_tok_pad = _round_up(n_tok, T)
    n_tiles = n_tok_pad // T

    # Vocab tiling: stream the table in (tV, d_model) slabs and accumulate.
    tV = min(_round_up(vocab_tile, 8), _round_up(vocab, 8))
    vocab_pad = _round_up(vocab, tV)
    n_vtiles = vocab_pad // tV

    flat_ids = token_ids.reshape(n_tok).astype(jnp.int32)
    if n_tok_pad != n_tok:
        flat_ids = jnp.pad(flat_ids, (0, n_tok_pad - n_tok))   # pad with id 0 (valid row)
    ids3d = flat_ids.reshape(n_tiles, T, 1)

    lut_p = lut
    if vocab_pad != vocab:
        lut_p = jnp.pad(lut, ((0, vocab_pad - vocab), (0, 0)))  # zero rows never selected

    # VMEM budget: double-buffered lut + out tiles, accumulator, ids tiles, headroom.
    itemsize = jnp.dtype(lut.dtype).itemsize
    vmem_need = (2 * tV * d_model * itemsize
                 + 2 * T * d_model * itemsize
                 + T * d_model * 4
                 + 2 * T * 128 * 4
                 + (2 << 20))
    vmem_limit = int(max(vmem_need, 32 * 1024 * 1024))

    out_flat = pl.pallas_call(
        functools.partial(_embed_kernel, scale=scale),
        out_shape=jax.ShapeDtypeStruct((n_tok_pad, d_model), lut.dtype),
        grid_spec=pltpu.PrefetchScalarGridSpec(
            num_scalar_prefetch=0,
            grid=(n_tiles, n_vtiles),            # tokens (parallel), vocab (reduction, last)
            in_specs=[
                pl.BlockSpec((1, T, 1), lambda i, v: (i, 0, 0)),    # per-tile token ids
                pl.BlockSpec((tV, d_model), lambda i, v: (v, 0)),   # lut slab
            ],
            out_specs=pl.BlockSpec((T, d_model), lambda i, v: (i, 0)),
            scratch_shapes=[pltpu.VMEM((T, d_model), jnp.float32)],
        ),
        compiler_params=pltpu.CompilerParams(
            dimension_semantics=("parallel", "arbitrary"),
            vmem_limit_bytes=vmem_limit,
        ),
    )(ids3d, lut_p)

    return out_flat[:n_tok].reshape(B, S, d_model)


if __name__ == "__main__":
    B, S = 2, 8
    vocab, d_model = 64, 128

    key = jax.random.PRNGKey(0)
    k_lut, k_ids = jax.random.split(key)

    # deterministic synthetic "weights" (nn.Embedding default init ~ N(0,1))
    lut = jax.random.normal(k_lut, (vocab, d_model), dtype=jnp.float32)
    token_ids = jax.random.randint(k_ids, (B, S), 0, vocab, dtype=jnp.int32)

    out = embedding_forward(token_ids, lut)
    out = jax.block_until_ready(out)

    # reference check (plain JAX)
    ref = jnp.take(lut, token_ids, axis=0) * math.sqrt(d_model)
    assert out.shape == (B, S, d_model)
    assert jnp.allclose(out, ref, atol=1e-4, rtol=1e-5), float(jnp.max(jnp.abs(out - ref)))

    print("KERNEL_OK")
</pallas_src>

<mosaic_0001>
module attributes {stable_mosaic.version = 11 : i64} {
  func.func @_embed_kernel(%arg0: i32, %arg1: i32, %arg2: memref<1x16x1xi32, #tpu.memory_space<vmem>>, %arg3: memref<64x128xf32, #tpu.memory_space<vmem>>, %arg4: memref<16x128xf32, #tpu.memory_space<vmem>>, %arg5: memref<16x128xf32, #tpu.memory_space<vmem>>) attributes {dimension_semantics = [#tpu.dimension_semantics<parallel>, #tpu.dimension_semantics<arbitrary>], iteration_bounds = array<i64: 1, 1>, scalar_prefetch = 0 : i64, scratch_operands = 1 : i64, tpu.core_type = #tpu.core_type<tc>, window_params = [{transform_indices = @transform_0, window_bounds = array<i64: 1, 16, 1>}, {transform_indices = @transform_1, window_bounds = array<i64: 64, 128>}, {transform_indices = @transform_2, window_bounds = array<i64: 16, 128>}]} {
    %c0_i32 = arith.constant 0 : i32
    %0 = arith.cmpi eq, %arg1, %c0_i32 : i32
    %1 = arith.extui %0 : i1 to i32
    %c0_i32_0 = arith.constant 0 : i32
    %2 = arith.cmpi ne, %1, %c0_i32_0 : i32
    scf.if %2 {
      %cst_11 = arith.constant 0.000000e+00 : f32
      %21 = vector.broadcast %cst_11 : f32 to vector<16x128xf32>
      %c0_12 = arith.constant 0 : index
      %c0_13 = arith.constant 0 : index
      %22 = vector.load %arg5[%c0_12, %c0_13] : memref<16x128xf32, #tpu.memory_space<vmem>>, vector<16x128xf32>
      tpu.vector_store %arg5[%c0_12, %c0_13], %21 {strides = array<i32>} : memref<16x128xf32, #tpu.memory_space<vmem>>, vector<16x128xf32>,
    } else {
    }
    %c0 = arith.constant 0 : index
    %c0_1 = arith.constant 0 : index
    %c0_2 = arith.constant 0 : index
    %3 = vector.load %arg2[%c0, %c0_1, %c0_2] : memref<1x16x1xi32, #tpu.memory_space<vmem>>, vector<1x16x1xi32>
    %4 = vector.shape_cast %3 : vector<1x16x1xi32> to vector<16x1xi32>
    %5 = tpu.iota {dimensions = array<i32: 1>} : vector<16x64xi32>
    %c64_i32 = arith.constant 64 : i32
    %6 = arith.muli %arg1, %c64_i32 : i32
    %7 = vector.broadcast %6 : i32 to vector<16x64xi32>
    %8 = arith.addi %5, %7 : vector<16x64xi32>
    %9 = vector.broadcast %4 : vector<16x1xi32> to vector<16x64xi32>
    %10 = arith.cmpi eq, %9, %8 : vector<16x64xi32>
    %11 = arith.extui %10 : vector<16x64xi1> to vector<16x64xi32>
    %12 = arith.sitofp %11 : vector<16x64xi32> to vector<16x64xf32>
    %c0_3 = arith.constant 0 : index
    %c0_4 = arith.constant 0 : index
    %13 = vector.load %arg5[%c0_3, %c0_4] : memref<16x128xf32, #tpu.memory_space<vmem>>, vector<16x128xf32>
    %c0_5 = arith.constant 0 : index
    %c0_6 = arith.constant 0 : index
    %14 = vector.load %arg3[%c0_5, %c0_6] : memref<64x128xf32, #tpu.memory_space<vmem>>, vector<64x128xf32>
    %cst = arith.constant dense<0.000000e+00> : vector<16x128xf32>
    %15 = tpu.matmul %12, %14, %cst {dimension_numbers = #tpu.dot_dimension_numbers<[1], [0], [0], [1], [0, 0, 1, 1], [], []>, precision = #tpu.contract_precision<fp32>} : vector<16x64xf32>, vector<64x128xf32>, vector<16x128xf32> -> vector<16x128xf32>
    %16 = arith.addf %13, %15 : vector<16x128xf32>
    %c0_7 = arith.constant 0 : index
    %c0_8 = arith.constant 0 : index
    %17 = vector.load %arg5[%c0_7, %c0_8] : memref<16x128xf32, #tpu.memory_space<vmem>>, vector<16x128xf32>
    tpu.vector_store %arg5[%c0_7, %c0_8], %16 {strides = array<i32>} : memref<16x128xf32, #tpu.memory_space<vmem>>, vector<16x128xf32>,
    %c0_i32_9 = arith.constant 0 : i32
    %18 = arith.cmpi eq, %arg1, %c0_i32_9 : i32
    %19 = arith.extui %18 : i1 to i32
    %c0_i32_10 = arith.constant 0 : i32
    %20 = arith.cmpi ne, %19, %c0_i32_10 : i32
    scf.if %20 {
      %c0_11 = arith.constant 0 : index
      %c0_12 = arith.constant 0 : index
      %21 = vector.load %arg5[%c0_11, %c0_12] : memref<16x128xf32, #tpu.memory_space<vmem>>, vector<16x128xf32>
      %cst_13 = arith.constant 11.3137083 : f32
      %22 = vector.broadcast %cst_13 : f32 to vector<16x128xf32>
      %23 = arith.mulf %21, %22 : vector<16x128xf32>
      %c0_14 = arith.constant 0 : index
      %c0_15 = arith.constant 0 : index
      %24 = vector.load %arg4[%c0_14, %c0_15] : memref<16x128xf32, #tpu.memory_space<vmem>>, vector<16x128xf32>
      tpu.vector_store %arg4[%c0_14, %c0_15], %23 {strides = array<i32>} : memref<16x128xf32, #tpu.memory_space<vmem>>, vector<16x128xf32>,
    } else {
    }
    return
  }
  func.func @transform_0(%arg0: i32, %arg1: i32) -> (i32, i32, i32) {
    %c0_i32 = arith.constant 0 : i32
    %c0_i32_0 = arith.constant 0 : i32
    %c0_i32_1 = arith.constant 0 : i32
    return %arg0, %c0_i32, %c0_i32_0 : i32, i32, i32
  }
  func.func @transform_1(%arg0: i32, %arg1: i32) -> (i32, i32) {
    %c0_i32 = arith.constant 0 : i32
    %c0_i32_0 = arith.constant 0 : i32
    return %arg1, %c0_i32 : i32, i32
  }
  func.func @transform_2(%arg0: i32, %arg1: i32) -> (i32, i32) {
    %c0_i32 = arith.constant 0 : i32
    %c0_i32_0 = arith.constant 0 : i32
    return %arg0, %c0_i32 : i32, i32
  }
}

</mosaic_0001>

<bundles_post_ra>
// kernel: tpu_custom_call.1
= control target key start
LH: loop header
LB: loop body
LE: loop exit
PB: predicated region body
PF: predicated region fallthrough
CT: control target
= control target key end

     0   :  { %7 = vsyncpa [#allocation4], 0  ;;  %s559_s0 = inlined_call_operand.vmem [shape: s32[1,16,1], index: 0, kind: input, shape index: {}]   ;;  %s560_s1 = inlined_call_operand.hbm [shape: f32[64,128], index: 1, kind: input, shape index: {}]   ;;  %s561_s2 = inlined_call_operand.hbm [shape: f32[16,128], index: 2, kind: output, shape index: {}]  }
   0x1   :  { %8 = vsyncpa [#allocation5], 0  ;;  %s15_s11 = sshll.u32 %s560_s1, 4  ;;  %s453_s12 = smov [#allocation3]   ;;  %s16_s11 = int_to_ptr.hbm [resolvable:$true] %s15_s11 }
   0x2   :  { %s17_s13 = sshll.u32 %s453_s12, 4  ;;  %s454_s14 = smov 128   ;;  %s18_s13 = int_to_ptr.vmem [resolvable:$true] %s17_s13 }
   0x3   :  { %s455_s15 = smov 8  }
   0x4   :  { %23 = dma.hbm_to_vmem [thread:$0]  %s16_s11, 1024, %s18_s13, [#allocation4], %s454_s14, %s454_s14, %s455_s15  }
   0x5   :  { %449 = dma.done.wait [#allocation4], 1024  }
   0x6   :  { %450 = vsyncadd [#allocation4], 4294966272  ;;  %v456_v0 = vmov 0   ;;  %v34_v1 = vld [vmem:[%s559_s0] sm:$0xff]  ;;  %v62_v2 = vld [vmem:[#allocation3 + $0x38] sm:$0xff]  ;;  %v36_v51 = vlaneseq  ;;  %vm63_vm0 = vcmask 523264  }
   0x7   :  { %400 = vset.pattern.permute.xlu0 %v456_v0  ;;  %v483_v3 = vand.u32 4294901760, %v62_v2  ;;  %v61_v4 = vld [vmem:[#allocation3 + $0x30] sm:$0xff]  ;;  %v60_v5 = vld [vmem:[#allocation3 + $0x28] sm:$0xff]  ;;  %v59_v6 = vld [vmem:[#allocation3 + $0x20] sm:$0xff]  ;;  %v457_v54 = vmov 0.0   ;;  %s357_s22 = sshll.u32 %s561_s2, 4  ;;  %s358_s22 = int_to_ptr.hbm [resolvable:$true] %s357_s22 }
   0x8   :  { %42 = vperm.xlu0 %400, %v34_v1   ;;  %v485_v7 = vand.u32 4294901760, %v61_v4  ;;  %v487_v8 = vand.u32 4294901760, %v60_v5  ;;  %v489_v9 = vand.u32 4294901760, %v59_v6  ;;  %v58_v10 = vld [vmem:[#allocation3 + $0x18] sm:$0xff]  ;;  %v57_v11 = vld [vmem:[#allocation3 + $0x10] sm:$0xff]  ;;  %v56_v12 = vld [vmem:[#allocation3 + $0x8] sm:$0xff] }
   0x9   :  { %v120_v13 = vsub.f32 %v62_v2, %v483_v3  ;;  %228 = vmatpush.msra.mxu3 %v483_v3  ;;  %v493_v14 = vand.u32 4294901760, %v58_v10  ;;  %79 = vmatpush.msra.mxu0 %v483_v3  ;;  %v496_v15 = vand.u32 4294901760, %v57_v11  ;;  %v498_v16 = vand.u32 4294901760, %v56_v12  ;;  %v35_v23 = vld [vmem:[%s559_s0 + $0x8] sm:$0xff]  ;;  %v55_v45 = vld [vmem:[#allocation3] sm:$0xff]  ;;  %s458_s0 = smov [#allocation6]  }
   0xa   :  { %v126_v17 = vsub.f32 %v61_v4, %v485_v7  ;;  %v132_v18 = vsub.f32 %v60_v5, %v487_v8  ;;  %v138_v19 = vsub.f32 %v59_v6, %v489_v9  ;;  %v92_v46 = vand.u32 4294901760, %v55_v45  ;;  %s355_s19 = sshll.u32 %s458_s0, 4  ;;  %s356_s19 = int_to_ptr.vmem [resolvable:$true] %s355_s19 }
   0xb   :  { %v121_v20 = vand.u32 4294901760, %v120_v13  ;;  %186 = vmatpush.msra.mxu2 %v120_v13  ;;  %230 = vmatpush.msra.mxu3 %v485_v7  ;;  %v144_v21 = vsub.f32 %v58_v10, %v493_v14  ;;  %v150_v22 = vsub.f32 %v57_v11, %v496_v15  ;;  %v156_v29 = vsub.f32 %v56_v12, %v498_v16 }
   0xc   :  { %v127_v24 = vand.u32 4294901760, %v126_v17  ;;  %v133_v25 = vand.u32 4294901760, %v132_v18  ;;  %v509_v26 = vand.u32 4294901760, %v138_v19  ;;  %81 = vmatpush.msra.mxu0 %v485_v7  ;;  %v162_v47 = vsub.f32 %v55_v45, %v92_v46 }
   0xd   :  { %v122_v27 = vsub.f32 %v120_v13, %v121_v20  ;;  %189 = vmatpush.msra.mxu2 %v126_v17  ;;  %v512_v28 = vand.u32 4294901760, %v144_v21  ;;  %232 = vmatpush.msra.mxu3 %v487_v8  ;;  %v151_v34 = vand.u32 4294901760, %v150_v22  ;;  %v157_v38 = vand.u32 4294901760, %v156_v29 }
   0xe   :  { %v128_v30 = vsub.f32 %v126_v17, %v127_v24  ;;  %v134_v31 = vsub.f32 %v132_v18, %v133_v25  ;;  %83 = vmatpush.msra.mxu0 %v487_v8  ;;  %v140_v33 = vsub.f32 %v138_v19, %v509_v26  ;;  %v163_v48 = vand.u32 4294901760, %v162_v47 }
   0xf   :  { %v123_v32 = vand.u32 4294901760, %v122_v27  ;;  %192 = vmatpush.msra.mxu2 %v132_v18  ;;  %234 = vmatpush.msra.mxu3 %v489_v9  ;;  %v146_v37 = vsub.f32 %v144_v21, %v512_v28  ;;  %v152_v40 = vsub.f32 %v150_v22, %v151_v34  ;;  %v158_v42 = vsub.f32 %v156_v29, %v157_v38 }
  0x10   :  { %45 = vperm.xlu0 %400, %v35_v23   ;;  %v129_v35 = vand.u32 4294901760, %v128_v30  ;;  %85 = vmatpush.msra.mxu0 %v489_v9  ;;  %v135_v36 = vand.u32 4294901760, %v134_v31  ;;  %v141_v39 = vand.u32 4294901760, %v140_v33  ;;  %v164_v49 = vsub.f32 %v162_v47, %v163_v48 }
  0x11   :  { %124 = vmatpush.msra.mxu1 %v123_v32  ;;  %195 = vmatpush.msra.mxu2 %v138_v19  ;;  %v147_v41 = vand.u32 4294901760, %v146_v37  ;;  %v153_v43 = vand.u32 4294901760, %v152_v40  ;;  %v159_v44 = vand.u32 4294901760, %v158_v42  ;;  %v37_v52 = vand.u32 127, %v36_v51 }
  0x12   :  { %236 = vmatpush.msra.mxu3 %v493_v14  ;;  %87 = vmatpush.msra.mxu0 %v493_v14  ;;  %v165_v50 = vand.u32 4294901760, %v164_v49 }
  0x13   :  { %130 = vmatpush.msra.mxu1 %v129_v35  ;;  %198 = vmatpush.msra.mxu2 %v144_v21 }
  0x14   :  { %238 = vmatpush.msra.mxu3 %v496_v15  ;;  %89 = vmatpush.msra.mxu0 %v496_v15 }
  0x15   :  { %136 = vmatpush.msra.mxu1 %v135_v36  ;;  %201 = vmatpush.msra.mxu2 %v150_v22 }
  0x16   :  { %240 = vmatpush.msra.mxu3 %v498_v16  ;;  %91 = vmatpush.msra.mxu0 %v498_v16 }
  0x17   :  { %142 = vmatpush.msra.mxu1 %v141_v39  ;;  %204 = vmatpush.msra.mxu2 %v156_v29 }
  0x18   :  { %242 = vmatpush.msra.mxu3 %v92_v46  ;;  %93 = vmatpush.msra.mxu0 %v92_v46 }
  0x19   :  { %148 = vmatpush.msra.mxu1 %v147_v41  ;;  %207 = vmatpush.msra.mxu2 %v162_v47 }
  0x1a   :  { %386 = vmatpush.msrb.mxu3 %v483_v3  ;;  %267 = vmatpush.msrb.mxu0 %v121_v20 }
  0x1b   :  { %154 = vmatpush.msra.mxu1 %v153_v43  ;;  %378 = vmatpush.msrb.mxu2 %v121_v20 }
  0x1c   :  { %387 = vmatpush.msrb.mxu3 %v485_v7  ;;  %271 = vmatpush.msrb.mxu0 %v127_v24 }
  0x1d   :  { %160 = vmatpush.msra.mxu1 %v159_v44  ;;  %379 = vmatpush.msrb.mxu2 %v127_v24 }
  0x1e   :  { %388 = vmatpush.msrb.mxu3 %v487_v8  ;;  %275 = vmatpush.msrb.mxu0 %v133_v25 }
  0x1f   :  { %380 = vmatpush.msrb.mxu2 %v133_v25  ;;  %166 = vmatpush.msra.mxu1 %v165_v50 }
  0x20   :  { %389 = vmatpush.msrb.mxu3 %v489_v9  ;;  %279 = vmatpush.msrb.mxu0 %v509_v26 }
  0x21   :  { %314 = vmatpush.msrb.mxu1 %v483_v3  ;;  %381 = vmatpush.msrb.mxu2 %v509_v26 }
  0x22   :  { %390 = vmatpush.msrb.mxu3 %v493_v14  ;;  %283 = vmatpush.msrb.mxu0 %v512_v28 }
  0x23   :  { %316 = vmatpush.msrb.mxu1 %v485_v7  ;;  %382 = vmatpush.msrb.mxu2 %v512_v28 }
  0x24   :  { %391 = vmatpush.msrb.mxu3 %v496_v15  ;;  %287 = vmatpush.msrb.mxu0 %v151_v34 }
  0x25   :  { %318 = vmatpush.msrb.mxu1 %v487_v8  ;;  %383 = vmatpush.msrb.mxu2 %v151_v34 }
  0x26   :  { %392 = vmatpush.msrb.mxu3 %v498_v16  ;;  %291 = vmatpush.msrb.mxu0 %v157_v38 }
  0x27   :  { %320 = vmatpush.msrb.mxu1 %v489_v9  ;;  %384 = vmatpush.msrb.mxu2 %v157_v38 }
  0x28   :  { %393 = vmatpush.msrb.mxu3 %v92_v46  ;;  %295 = vmatpush.msrb.mxu0 %v163_v48 }
  0x29   :  { %322 = vmatpush.msrb.mxu1 %v493_v14  ;;  %385 = vmatpush.msrb.mxu2 %v163_v48 }
  0x2b   :  { %324 = vmatpush.msrb.mxu1 %v496_v15 }
  0x2d   :  { %326 = vmatpush.msrb.mxu1 %v498_v16 }
  0x2f   :  { %328 = vmatpush.msrb.mxu1 %v92_v46 }
  0x7a   :  { %v43_v53 = vpop.permute.xlu0 %42 }
  0x7b   :  { %vm47_vm1 = vcmp.eq.s32.totalorder %v43_v53, %v37_v52 }
  0x7c   :  { %v370_v55 = vsel %vm47_vm1, 1.0, %v457_v54 }
  0x7d   :  { %372 = vmatmul.msk.f32.vlgmr.msra.gmra.mxu1 %vm63_vm0, %v370_v55  ;;  %v65_v56 = vsel %vm63_vm0, %v370_v55, 0 }
  0x7e   :  { %v95_v57 = vsub.f32 %v65_v56, %v65_v56 }
  0x80   :  { %210 = vmatmul.f32.vlgmr.msra.gmra.mxu2 %v95_v57  ;;  %v96_v58 = vand.u32 4294901760, %v95_v57 }
  0x82   :  { %246 = vmatmul.f32.vlgmr.msra.gmra.mxu3 %v96_v58  ;;  %v46_v59 = vpop.permute.xlu0 %45  ;;  %v97_v60 = vsub.f32 %v95_v57, %v96_v58 }
  0x83   :  { %vm48_vm2 = vcmp.eq.s32.totalorder %v46_v59, %v37_v52 }
  0x84   :  { %v371_v61 = vsel %vm48_vm2, 1.0, %v457_v54  ;;  %v98_v62 = vand.u32 4294901760, %v97_v60 }
  0x85   :  { %373 = vmatmul.msk.f32.gmra.mxu1 %vm63_vm0, %v371_v61  ;;  %v68_v63 = vsel %vm63_vm0, %v371_v61, 0 }
  0x86   :  { %99 = vmatmul.f32.vlgmr.msra.gmra.mxu0 %v98_v62  ;;  %v103_v0 = vsub.f32 %v68_v63, %v68_v63 }
  0x88   :  { %215 = vmatmul.f32.gmra.mxu2 %v103_v0  ;;  %v104_v1 = vand.u32 4294901760, %v103_v0 }
  0x8a   :  { %252 = vmatmul.f32.gmra.mxu3 %v104_v1  ;;  %v105_v2 = vsub.f32 %v103_v0, %v104_v1 }
  0x8c   :  { %v106_v3 = vand.u32 4294901760, %v105_v2 }
  0x8d   :  { %376 = vmatmul.msk.f32.vlgmr.msrb.gmra.mxu1 %vm63_vm0, %v370_v55 }
  0x8e   :  { %107 = vmatmul.f32.gmra.mxu0 %v106_v3 }
  0x90   :  { %375 = vmatmul.msk.f32.vlgmr.msrb.gmra.mxu2 %vm63_vm0, %v371_v61 }
  0x92   :  { %377 = vmatmul.msk.f32.vlgmr.msrb.gmra.mxu3 %vm63_vm0, %v371_v61 }
  0x96   :  { %374 = vmatmul.msk.f32.vlgmr.msrb.gmra.mxu0 %vm63_vm0, %v370_v55 }
  0xfa   :  { %v169_v4 = vpop.f32.mrf.mxu1 }
 0x102   :  { %v173_v8 = vpop.f32.mrf.mxu1 }
 0x103   :  { %v100_v5 = vpop.f32.mrf.mxu0  ;;  %v211_v6 = vpop.f32.mrf.mxu2 }
 0x104   :  { %v170_v9 = vadd.f32 %v169_v4, %v100_v5 }
 0x105   :  { %v247_v7 = vpop.f32.mrf.mxu3 }
 0x106   :  { %v212_v14 = vadd.f32 %v211_v6, %v170_v9 }
 0x108   :  { %v248_v16 = vadd.f32 %v247_v7, %v212_v14 }
 0x10a   :  { %v331_v22 = vpop.f32.mrf.mxu1 }
 0x10b   :  { %v108_v10 = vpop.f32.mrf.mxu0  ;;  %v216_v11 = vpop.f32.mrf.mxu2 }
 0x10c   :  { %v174_v12 = vadd.f32 %v173_v8, %v108_v10 }
 0x10d   :  { %v253_v13 = vpop.f32.mrf.mxu3 }
 0x10e   :  { %v217_v15 = vadd.f32 %v216_v11, %v174_v12 }
 0x110   :  { %v254_v17 = vadd.f32 %v253_v13, %v217_v15 }
 0x113   :  { %v298_v18 = vpop.f32.mrf.mxu0  ;;  %v302_v19 = vpop.f32.mrf.mxu2 }
 0x114   :  { %v299_v20 = vadd.f32 %v298_v18, %v248_v16  ;;  %v303_v21 = vadd.f32 %v302_v19, %v254_v17 }
 0x115   :  { %v335_v23 = vpop.f32.mrf.mxu3 }
 0x116   :  { %v332_v24 = vadd.f32 %v331_v22, %v299_v20  ;;  %v336_v25 = vadd.f32 %v335_v23, %v303_v21 }
 0x118   :  { %v347_v26 = vmul.f32 11.313708, %v332_v24  ;;  %v348_v27 = vmul.f32 11.313708, %v336_v25 }
 0x11a   :  { %349 = vst [vmem:[#allocation6] sm:$0xff] %v347_v26 }
 0x11b   :  { %350 = vst [vmem:[#allocation6 + $0x8] sm:$0xff] %v348_v27 }
 0x11c   :  { %363 = dma.vmem_to_hbm [thread:$0]  %s356_s19, 256, %s358_s22, [#allocation5], %s454_s14, %s454_s14, %s455_s15  }
 0x11d   :  { %451 = dma.done.wait [#allocation5], 256  }
 0x11e   :  { %452 = vsyncadd [#allocation5], 4294967040 }
 0x11f   :  { %368 = vsyncpa [#allocation4], 1 }
 0x120   :  { %369 = vsyncpa [#allocation5], 1 }

</bundles_post_ra>
